<compile_context>
chip_gen: v6e
topology: v6e:2x2x1
jax: 0.10.0
libtpu: 0.0.40
codegen_flags: <defaults>
</compile_context>

<pallas_src>
import jax
import jax.numpy as jnp
from jax import lax
from jax.experimental import pallas as pl
from jax.experimental.pallas import tpu as pltpu

_INV_SQRT2 = 0.7071067811865476


def _patch_embed_kernel(x_ref, w_ref, b_ref, o_ref):
    # x_ref: (TS, C), w_ref: (C, E), b_ref: (1, E), o_ref: (TS, E)
    y = jnp.dot(x_ref[...], w_ref[...], preferred_element_type=jnp.float32)
    y = y + b_ref[...]
    # PyTorch nn.GELU() default is the exact erf formulation.
    o_ref[...] = (0.5 * y * (1.0 + lax.erf(y * _INV_SQRT2))).astype(o_ref.dtype)


def _round_up(n, m):
    return ((n + m - 1) // m) * m


def _choose_tile_s(S, C, E, *, vmem_block_budget_bytes=8 << 20, max_tile=8192):
    """Spatial tile (sublane axis of the (tile_s, E) blocks).

    Purely VMEM-budget driven: double-buffered in+out blocks use
    2 * (C + E) * tile_s * 4 bytes.  Fill up to `vmem_block_budget_bytes`
    (8 MiB default -- fits every generation's default scoped VMEM with
    headroom; weight/bias blocks are tiny and ignored), cap at `max_tile`,
    and never exceed the 128-padded spatial extent.  No shrinking to
    manufacture grid parallelism: per-step overhead (~0.35 us) plus the DMA
    efficiency falloff below ~512-wide tiles cost more than it buys, and on
    v7x the batch axis already supplies one block per TensorCore.
    """
    per_col_bytes = 2 * (C + E) * 4           # dbl-buffered input + output columns
    budget_tile = (vmem_block_budget_bytes // per_col_bytes) // 128 * 128
    tile = max(128, min(budget_tile, max_tile))
    return min(tile, _round_up(S, 128))


@jax.jit
def patch_embed_forward(x_nchw, weight, bias):
    """x_nchw: (B, C_in, H, W); weight: (E, C_in) [torch conv weight squeezed];
    bias: (E,).  Returns (B, H, W, E) == PyTorch's proj(x).permute(0, 2, 3, 1)."""
    B, C, H, W = x_nchw.shape
    E = weight.shape[0]
    S = H * W
    tile_s = _choose_tile_s(S, C, E)

    # NCHW -> (B, S, C).  This input-side permute is C/E (<= 1/8 here) of the
    # bytes the old output-side permute touched, and lets the kernel do a
    # standard (tile_s, C) @ (C, E) MXU matmul with NHWC output written
    # straight from the kernel.
    x_bsc = jnp.transpose(x_nchw, (0, 2, 3, 1)).reshape(B, S, C).astype(jnp.float32)
    w_ce = jnp.transpose(weight).astype(jnp.float32)      # (C, E)
    b_row = bias.reshape(1, E).astype(jnp.float32)         # (1, E), broadcasts over rows

    grid = (B, pl.cdiv(S, tile_s))   # tail block padded/dropped; row j of the
                                     # output depends only on row j of the input,
                                     # so tail padding never contaminates results.
    out_bse = pl.pallas_call(
        _patch_embed_kernel,
        out_shape=jax.ShapeDtypeStruct((B, S, E), jnp.float32),
        grid_spec=pltpu.PrefetchScalarGridSpec(
            num_scalar_prefetch=0,
            grid=grid,
            in_specs=[
                pl.BlockSpec((None, tile_s, C), lambda b, s: (b, s, 0)),
                pl.BlockSpec((C, E), lambda b, s: (0, 0)),   # resident weight
                pl.BlockSpec((1, E), lambda b, s: (0, 0)),   # resident bias
            ],
            out_specs=pl.BlockSpec((None, tile_s, E), lambda b, s: (b, s, 0)),
        ),
        compiler_params=pltpu.CompilerParams(
            dimension_semantics=("parallel", "parallel"),
            # Block VMEM is budgeted to <= 8 MiB (see _choose_tile_s), under the
            # default scoped-VMEM limit on v5e (16 MiB) and v6e/v7x (32 MiB), so
            # vmem_limit_bytes is intentionally left at its default.
        ),
    )(x_bsc, w_ce, b_row)

    # (B, S, E) -> (B, H, W, E): metadata-only reshape, no data movement.
    return out_bse.reshape(B, H, W, E)


if __name__ == "__main__":
    # Module config: patch_size=1, in_chans=4, embed_dim=32, norm_layer=None
    B, C_IN, H, W = 2, 4, 16, 16
    EMBED_DIM = 32

    key = jax.random.PRNGKey(0)
    kx, kw, kb = jax.random.split(key, 3)

    x = jax.random.normal(kx, (B, C_IN, H, W), dtype=jnp.float32)
    # Conv2d(in_chans, embed_dim, kernel_size=1): weight (E, C_in, 1, 1) -> (E, C_in)
    weight = jax.random.normal(kw, (EMBED_DIM, C_IN), dtype=jnp.float32) * 0.1
    bias = jax.random.normal(kb, (EMBED_DIM,), dtype=jnp.float32) * 0.1

    out = patch_embed_forward(x, weight, bias)
    out = jax.block_until_ready(out)

    # Reference in plain JAX (1x1 conv == per-pixel linear) + exact GELU.
    ref = jnp.einsum("bchw,ec->bhwe", x, weight,
                     precision=lax.Precision.HIGHEST) + bias
    ref = 0.5 * ref * (1.0 + lax.erf(ref / jnp.sqrt(2.0)))
    assert out.shape == (B, H, W, EMBED_DIM)
    assert jnp.allclose(out, ref, atol=1e-5, rtol=1e-5)

    print("KERNEL_OK")
</pallas_src>

<mosaic_0001>
module attributes {stable_mosaic.version = 11 : i64} {
  func.func @_patch_embed_kernel(%arg0: i32, %arg1: i32, %arg2: memref<1x256x4xf32, #tpu.memory_space<vmem>>, %arg3: memref<4x32xf32, #tpu.memory_space<vmem>>, %arg4: memref<1x32xf32, #tpu.memory_space<vmem>>, %arg5: memref<1x256x32xf32, #tpu.memory_space<vmem>>) attributes {dimension_semantics = [#tpu.dimension_semantics<parallel>, #tpu.dimension_semantics<parallel>], iteration_bounds = array<i64: 2, 1>, scalar_prefetch = 0 : i64, scratch_operands = 0 : i64, tpu.core_type = #tpu.core_type<tc>, window_params = [{transform_indices = @transform_0, window_bounds = array<i64: 1, 256, 4>}, {pipeline_mode = #tpu.pipeline_mode<synchronous>, transform_indices = @transform_1, window_bounds = array<i64: 4, 32>}, {pipeline_mode = #tpu.pipeline_mode<synchronous>, transform_indices = @transform_2, window_bounds = array<i64: 1, 32>}, {transform_indices = @transform_3, window_bounds = array<i64: 1, 256, 32>}]} {
    %c0 = arith.constant 0 : index
    %c0_0 = arith.constant 0 : index
    %c0_1 = arith.constant 0 : index
    %0 = vector.load %arg2[%c0, %c0_0, %c0_1] : memref<1x256x4xf32, #tpu.memory_space<vmem>>, vector<1x256x4xf32>
    %1 = vector.shape_cast %0 : vector<1x256x4xf32> to vector<256x4xf32>
    %c0_2 = arith.constant 0 : index
    %c0_3 = arith.constant 0 : index
    %2 = vector.load %arg3[%c0_2, %c0_3] : memref<4x32xf32, #tpu.memory_space<vmem>>, vector<4x32xf32>
    %cst = arith.constant dense<0.000000e+00> : vector<256x32xf32>
    %3 = tpu.matmul %1, %2, %cst {dimension_numbers = #tpu.dot_dimension_numbers<[1], [0], [0], [1], [0, 0, 1, 1], [], []>} : vector<256x4xf32>, vector<4x32xf32>, vector<256x32xf32> -> vector<256x32xf32>
    %c0_4 = arith.constant 0 : index
    %c0_5 = arith.constant 0 : index
    %4 = vector.load %arg4[%c0_4, %c0_5] : memref<1x32xf32, #tpu.memory_space<vmem>>, vector<1x32xf32>
    %5 = vector.broadcast %4 : vector<1x32xf32> to vector<256x32xf32>
    %6 = arith.addf %3, %5 : vector<256x32xf32>
    %cst_6 = arith.constant 5.000000e-01 : f32
    %7 = vector.broadcast %cst_6 : f32 to vector<256x32xf32>
    %8 = arith.mulf %7, %6 : vector<256x32xf32>
    %cst_7 = arith.constant 0.707106769 : f32
    %9 = vector.broadcast %cst_7 : f32 to vector<256x32xf32>
    %10 = arith.mulf %6, %9 : vector<256x32xf32>
    %11 = math.erf %10 : vector<256x32xf32>
    %cst_8 = arith.constant 1.000000e+00 : f32
    %12 = vector.broadcast %cst_8 : f32 to vector<256x32xf32>
    %13 = arith.addf %12, %11 : vector<256x32xf32>
    %14 = arith.mulf %8, %13 : vector<256x32xf32>
    %c0_9 = arith.constant 0 : index
    %c0_10 = arith.constant 0 : index
    %c0_11 = arith.constant 0 : index
    %15 = vector.load %arg5[%c0_9, %c0_10, %c0_11] : memref<1x256x32xf32, #tpu.memory_space<vmem>>, vector<1x256x32xf32>
    %16 = vector.shape_cast %15 : vector<1x256x32xf32> to vector<256x32xf32>
    %17 = vector.shape_cast %14 : vector<256x32xf32> to vector<1x256x32xf32>
    tpu.vector_store %arg5[%c0_9, %c0_10, %c0_11], %17 {strides = array<i32>} : memref<1x256x32xf32, #tpu.memory_space<vmem>>, vector<1x256x32xf32>,
    return
  }
  func.func @transform_0(%arg0: i32, %arg1: i32) -> (i32, i32, i32) {
    %c0_i32 = arith.constant 0 : i32
    %c0_i32_0 = arith.constant 0 : i32
    return %arg0, %arg1, %c0_i32 : i32, i32, i32
  }
  func.func @transform_1(%arg0: i32, %arg1: i32) -> (i32, i32) {
    %c0_i32 = arith.constant 0 : i32
    %c0_i32_0 = arith.constant 0 : i32
    %c0_i32_1 = arith.constant 0 : i32
    return %c0_i32, %c0_i32_0 : i32, i32
  }
  func.func @transform_2(%arg0: i32, %arg1: i32) -> (i32, i32) {
    %c0_i32 = arith.constant 0 : i32
    %c0_i32_0 = arith.constant 0 : i32
    %c0_i32_1 = arith.constant 0 : i32
    return %c0_i32, %c0_i32_0 : i32, i32
  }
  func.func @transform_3(%arg0: i32, %arg1: i32) -> (i32, i32, i32) {
    %c0_i32 = arith.constant 0 : i32
    %c0_i32_0 = arith.constant 0 : i32
    return %arg0, %arg1, %c0_i32 : i32, i32, i32
  }
}

</mosaic_0001>

<bundles_post_ra>
// kernel: patch_embed_forward.1
= control target key start
LH: loop header
LB: loop body
LE: loop exit
PB: predicated region body
PF: predicated region fallthrough
CT: control target
= control target key end

     0   :  { %8 = vsyncpa [#allocation3], 0  ;;  %s1592_s0 = inlined_call_operand.vmem [shape: f32[2,256,4], index: 0, kind: input, shape index: {}]   ;;  %s1593_s1 = inlined_call_operand.vmem [shape: f32[4,32], index: 1, kind: input, shape index: {}]   ;;  %s1594_s2 = inlined_call_operand.vmem [shape: f32[1,32], index: 2, kind: input, shape index: {}]   ;;  %s1595_s3 = inlined_call_operand.hbm [shape: f32[2,256,32], index: 3, kind: output, shape index: {}]  }
   0x1   :  { %10 = vsyncpa [#allocation3 + $0x1], 0  ;;  %s1210_s12 = smov 0   ;;  %s1212_s13 = smov 0  }
   0x2   :  { %s1214_s14 = smov 0   ;;  %s1216_s15 = smov 0  }
   0x3   :  { %s1218_s16 = smov 0   ;;  %s1220_s17 = smov 0  }
   0x4 LB: > { %s854_s18 = sadd.s32 4294967295, %s1185_s17   ;;  %s855_s19 = sadd.s32 4294967294, %s1185_s17   ;;  %s1185_s17 = sphi %s1220_s17, %s16_s17   ;;  %s1181_s16 = sphi %s1218_s16, %s1602_s16   ;;  %s1177_s15 = sphi %s1216_s15, %s1601_s15   ;;  %s1173_s14 = sphi %s1214_s14, %s1600_s14   ;;  %s1169_s13 = sphi %s1212_s13, %s1599_s13   ;;  %s1165_s12 = sphi %s1210_s12, %s1598_s12  }
   0x5   : > { %s28_s20 = sadd.s32 1, %s1181_s16  ;;  %s107_s21 = sadd.s32 1, %s1173_s14 }
   0x6   : > { %p30_p0 = scmp.ge.s32.totalorder %s28_s20, 2  ;;  %p117_p1 = scmp.ne.s32.totalorder %s1173_s14, %s1169_s13 }
   0x7   : > { %p118_p2 = scmp.eq.s32.totalorder %s854_s18, 1  ;;  %p123_p3 = scmp.ne.s32.totalorder %s1169_s13, %s1165_s12 }
   0x8   : > { %s1604_s20 = smov (%p30_p0, %s28_s20), 0  ;;  %p124_p5 = scmp.eq.s32.totalorder %s855_s19, 1 }
   0x9   : > { %p1250_p4 = por %p118_p2, %p117_p1  ;;  %s102_s23 = ssub.s32 %s1181_s16, %s1604_s20 }
   0xa   : > { %p858_p6 = scmp.ge.s32.totalorder %s1185_s17, 1  ;;  %p105_p7 = scmp.eq.s32.totalorder %s102_s23, 0 }
   0xb   : > { %p1257_p8 = por %p124_p5, %p123_p3  ;;  %p161_p9 = scmp.lt.s32.totalorder %s1185_s17, 3 }
   0xc   : > { %s1263_s25 = scalar_select %p105_p7, %s1173_s14, %s107_s21  }
   0xd   : > { %p162_p10 = pnand %p858_p6, %p161_p9 }
   0xe   : > { %p190_p11 = scmp.lt.s32.totalorder (!%p162_p10), %s1177_s15, 1  ;;  %s186_s8 = sand.u32 (!%p162_p10), 1, %s1169_s13  }
   0xf   : > { %165 = sbr.rel (%p162_p10) target bundleno = 296 (0x128), region = 32  ;;  %s1376_s9 = sshll.u32 (!%p162_p10), %s186_s8, 8 }
  0x10   : > { %s1395_s10 = scalar_lea.vmem (!%p162_p10), [#allocation2], %s1376_s9  ;;  %s902_s11 = sshll.u32 (!%p162_p10), %s1177_s15, 12 }
  0x11   : > { %s775_s18 = sshll.u32 (!%p162_p10), %s1395_s10, 4  ;;  %s1539_s23 = scalar_lea.hbm (!%p162_p10), %s1595_s3, %s902_s11  ;;  %s1541_s18 = int_to_ptr.vmem [resolvable:$true] %s775_s18 }
  0x12   : > { %s1109_s26 = scalar_lea.vmem (!%p162_p10), %s1541_s18, 4096  ;;  %s1187_s27 = smov (!%p162_p10), [#allocation2]  }
  0x13   : > { %p1110_p12 = scmp.ne.s32.totalorder (!%p162_p10), %s1541_s18, %s1109_s26 }
  0x14   : > { %v232_v0 = vld [vmem:[%s1593_s1] sm:$0xf]  ;;  %vm337_vm0 = vcmask 1043456   ;;  %s191_s28 = scalar_select %p190_p11, %s1177_s15, 1  ;;  %vm240_vm1 = vcmask 31744   ;;  %vm726_vm2 = vcmask 261120  }
  0x15   : > { %936 = vmatprep.subr.msk.mxu0 %vm337_vm0, %v232_v0  ;;  %986 = vmatprep.subr.msk.mxu1 %vm337_vm0, %v232_v0  ;;  %v1342_v33 = vld [vmem:[%s1594_s2] ss:$0 sm:$0xff]  ;;  %s1547_s15 = scalar_lea.sflag [#allocation3], %s186_s8  ;;  %p1111_p13 = pnand %p1110_p12, %p1250_p4 }
  0x16   : > { %937 = vmatpush3.msk.msra.mxu0 %vm337_vm0, %v232_v0  ;;  %987 = vmatpush3.msk.msra.mxu1 %vm337_vm0, %v232_v0  ;;  %s901_s29 = sshll.u32 %s191_s28, 8  ;;  %s1113_s28 = sshll.u32 %s1187_s27, 4  ;;  %s1114_s28 = int_to_ptr.vmem [resolvable:$false] %s1113_s28 }
  0x17   : > { %s1273_s5 = scalar_lea.vmem %s1592_s0, %s901_s29  ;;  %p1112_p0 = pneg %p1111_p13 }
  0x18   : > { %v200_v1 = vld [vmem:[%s1273_s5] sm:$0xff]  ;;  %v201_v3 = vld [vmem:[%s1273_s5 + $0x8] sm:$0xff]  ;;  %v202_v5 = vld [vmem:[%s1273_s5 + $0x10] sm:$0xff]  ;;  %s1115_s29 = scalar_lea.vmem %s1114_s28, 8192  ;;  %p1116_p1 = scmp.lt.s32.totalorder %s1541_s18, %s1114_s28 }
  0x19   : > { %v216_v2 = vld [vmem:[%s1273_s5 + $0x80] sm:$0xff]  ;;  %938 = vmatprep.mubr.msk.f32.mxu0 %vm240_vm1, %v200_v1  ;;  %v217_v4 = vld [vmem:[%s1273_s5 + $0x88] sm:$0xff]  ;;  %v218_v6 = vld [vmem:[%s1273_s5 + $0x90] sm:$0xff]  ;;  %p1117_p2 = scmp.lt.s32.totalorder %s1115_s29, %s1109_s26 }
  0x1a   : > { %962 = vmatprep.mubr.msk.f32.mxu1 %vm240_vm1, %v216_v2  ;;  %939 = vmatmul.mubr.msk.f32.vlgmr.msra.gmra.mxu0 %vm240_vm1, %v201_v3  ;;  %v203_v7 = vld [vmem:[%s1273_s5 + $0x18] sm:$0xff]  ;;  %v204_v9 = vld [vmem:[%s1273_s5 + $0x20] sm:$0xff]  ;;  %v205_v11 = vld [vmem:[%s1273_s5 + $0x28] sm:$0xff] }
  0x1b   : > { %963 = vmatmul.mubr.msk.f32.vlgmr.msra.gmra.mxu1 %vm240_vm1, %v217_v4  ;;  %941 = vmatprep.mubr.msk.f32.mxu0 %vm240_vm1, %v202_v5  ;;  %v219_v8 = vld [vmem:[%s1273_s5 + $0x98] sm:$0xff]  ;;  %v220_v10 = vld [vmem:[%s1273_s5 + $0xa0] sm:$0xff]  ;;  %v221_v12 = vld [vmem:[%s1273_s5 + $0xa8] sm:$0xff]  ;;  %p1118_p3 = por %p1117_p2, %p1116_p1 }
  0x1c   : > { %965 = vmatprep.mubr.msk.f32.mxu1 %vm240_vm1, %v218_v6  ;;  %v206_v13 = vld [vmem:[%s1273_s5 + $0x30] sm:$0xff]  ;;  %v207_v15 = vld [vmem:[%s1273_s5 + $0x38] sm:$0xff]  ;;  %v208_v17 = vld [vmem:[%s1273_s5 + $0x40] sm:$0xff] }
  0x1d   : > { %v222_v14 = vld [vmem:[%s1273_s5 + $0xb0] sm:$0xff]  ;;  %v223_v16 = vld [vmem:[%s1273_s5 + $0xb8] sm:$0xff]  ;;  %v224_v18 = vld [vmem:[%s1273_s5 + $0xc0] sm:$0xff]  ;;  %p1119_p5 = pnand %p1118_p3, %p1112_p0 }
  0x1e   : > { %942 = vmatmul.mubr.msk.f32.gmra.mxu0 %vm240_vm1, %v203_v7  ;;  %v209_v19 = vld [vmem:[%s1273_s5 + $0x48] sm:$0xff]  ;;  %v210_v21 = vld [vmem:[%s1273_s5 + $0x50] sm:$0xff]  ;;  %v211_v23 = vld [vmem:[%s1273_s5 + $0x58] sm:$0xff] }
  0x1f   : > { %966 = vmatmul.mubr.msk.f32.gmra.mxu1 %vm240_vm1, %v219_v8  ;;  %944 = vmatprep.mubr.msk.f32.mxu0 %vm240_vm1, %v204_v9  ;;  %v225_v20 = vld [vmem:[%s1273_s5 + $0xc8] sm:$0xff]  ;;  %v226_v22 = vld [vmem:[%s1273_s5 + $0xd0] sm:$0xff]  ;;  %v227_v24 = vld [vmem:[%s1273_s5 + $0xd8] sm:$0xff] }
  0x20   : > { %968 = vmatprep.mubr.msk.f32.mxu1 %vm240_vm1, %v220_v10  ;;  %v212_v25 = vld [vmem:[%s1273_s5 + $0x60] sm:$0xff]  ;;  %v213_v27 = vld [vmem:[%s1273_s5 + $0x68] sm:$0xff]  ;;  %v214_v29 = vld [vmem:[%s1273_s5 + $0x70] sm:$0xff] }
  0x21   : > { %v228_v26 = vld [vmem:[%s1273_s5 + $0xe0] sm:$0xff]  ;;  %v229_v28 = vld [vmem:[%s1273_s5 + $0xe8] sm:$0xff]  ;;  %v230_v30 = vld [vmem:[%s1273_s5 + $0xf0] sm:$0xff] }
  0x22   : > { %945 = vmatmul.mubr.msk.f32.gmra.mxu0 %vm240_vm1, %v205_v11  ;;  %v215_v31 = vld [vmem:[%s1273_s5 + $0x78] sm:$0xff] }
  0x23   : > { %969 = vmatmul.mubr.msk.f32.gmra.mxu1 %vm240_vm1, %v221_v12  ;;  %947 = vmatprep.mubr.msk.f32.mxu0 %vm240_vm1, %v206_v13  ;;  %v231_v32 = vld [vmem:[%s1273_s5 + $0xf8] sm:$0xff] }
  0x24   : > { %971 = vmatprep.mubr.msk.f32.mxu1 %vm240_vm1, %v222_v14 }
  0x26   : > { %948 = vmatmul.mubr.msk.f32.gmra.mxu0 %vm240_vm1, %v207_v15 }
  0x27   : > { %972 = vmatmul.mubr.msk.f32.gmra.mxu1 %vm240_vm1, %v223_v16  ;;  %950 = vmatprep.mubr.msk.f32.mxu0 %vm240_vm1, %v208_v17 }
  0x28   : > { %974 = vmatprep.mubr.msk.f32.mxu1 %vm240_vm1, %v224_v18 }
  0x2a   : > { %951 = vmatmul.mubr.msk.f32.gmra.mxu0 %vm240_vm1, %v209_v19 }
  0x2b   : > { %975 = vmatmul.mubr.msk.f32.gmra.mxu1 %vm240_vm1, %v225_v20  ;;  %953 = vmatprep.mubr.msk.f32.mxu0 %vm240_vm1, %v210_v21 }
  0x2c   : > { %977 = vmatprep.mubr.msk.f32.mxu1 %vm240_vm1, %v226_v22 }
  0x2e   : > { %954 = vmatmul.mubr.msk.f32.gmra.mxu0 %vm240_vm1, %v211_v23 }
  0x2f   : > { %978 = vmatmul.mubr.msk.f32.gmra.mxu1 %vm240_vm1, %v227_v24  ;;  %956 = vmatprep.mubr.msk.f32.mxu0 %vm240_vm1, %v212_v25 }
  0x30   : > { %980 = vmatprep.mubr.msk.f32.mxu1 %vm240_vm1, %v228_v26 }
  0x32   : > { %957 = vmatmul.mubr.msk.f32.gmra.mxu0 %vm240_vm1, %v213_v27 }
  0x33   : > { %981 = vmatmul.mubr.msk.f32.gmra.mxu1 %vm240_vm1, %v229_v28  ;;  %959 = vmatprep.mubr.msk.f32.mxu0 %vm240_vm1, %v214_v29 }
  0x34   : > { %983 = vmatprep.mubr.msk.f32.mxu1 %vm240_vm1, %v230_v30 }
  0x36   : > { %960 = vmatmul.mubr.msk.f32.gmra.mxu0 %vm240_vm1, %v215_v31 }
  0x37   : > { %984 = vmatmul.mubr.msk.f32.gmra.mxu1 %vm240_vm1, %v231_v32 }
  0xda   : > { %v940_v34 = vpop.f32.mrf.mxu0 }
  0xdb   : > { %v964_v35 = vpop.f32.mrf.mxu1  ;;  %v413_v36 = vadd.f32 %v940_v34, %v1342_v33 }
  0xdc   : > { %v493_v37 = vadd.f32 %v964_v35, %v1342_v33  ;;  %v407_v38 = vpop.f32.mrf.mxu0 }
  0xdd   : > { %v487_v39 = vpop.f32.mrf.mxu1  ;;  %v599_v40 = vmul.f32 0.70710677, %v413_v36  ;;  %v408_v42 = vadd.f32 %v1342_v33, %v407_v38  ;;  %v567_v11 = vmul.f32 0.5, %v413_v36 }
  0xde   : > { %v615_v41 = vmul.f32 0.70710677, %v493_v37  ;;  %v488_v43 = vadd.f32 %v1342_v33, %v487_v39  ;;  %v943_v44 = vpop.f32.mrf.mxu0  ;;  %v583_v12 = vmul.f32 0.5, %v493_v37 }
  0xdf   : > { %v967_v45 = vpop.f32.mrf.mxu1  ;;  %1045 = verf.f32 %v599_v40  ;;  %v423_v46 = vadd.f32 %v943_v44, %v1342_v33  ;;  %v598_v48 = vmul.f32 0.70710677, %v408_v42  ;;  %v566_v14 = vmul.f32 0.5, %v408_v42 }
  0xe0   : > { %v503_v47 = vadd.f32 %v967_v45, %v1342_v33  ;;  %1047 = verf.f32 %v615_v41  ;;  %v417_v49 = vpop.f32.mrf.mxu0  ;;  %v614_v51 = vmul.f32 0.70710677, %v488_v43  ;;  %v582_v23 = vmul.f32 0.5, %v488_v43 }
  0xe1   : > { %v497_v50 = vpop.f32.mrf.mxu1  ;;  %v601_v52 = vmul.f32 0.70710677, %v423_v46  ;;  %1049 = verf.f32 %v598_v48  ;;  %v418_v54 = vadd.f32 %v1342_v33, %v417_v49  ;;  %v569_v24 = vmul.f32 0.5, %v423_v46 }
  0xe2   : > { %v617_v53 = vmul.f32 0.70710677, %v503_v47  ;;  %v498_v55 = vadd.f32 %v1342_v33, %v497_v50  ;;  %v946_v56 = vpop.f32.mrf.mxu0  ;;  %1051 = verf.f32 %v614_v51  ;;  %v585_v30 = vmul.f32 0.5, %v503_v47 }
  0xe3   : > { %v970_v57 = vpop.f32.mrf.mxu1  ;;  %v433_v58 = vadd.f32 %v946_v56, %v1342_v33  ;;  %1053 = verf.f32 %v601_v52  ;;  %v600_v60 = vmul.f32 0.70710677, %v418_v54  ;;  %v568_v34 = vmul.f32 0.5, %v418_v54 }
  0xe4   : > { %v1354_v59 = vadd.f32 %v970_v57, %v1342_v33  ;;  %v427_v61 = vpop.f32.mrf.mxu0  ;;  %1055 = verf.f32 %v617_v53  ;;  %v616_v63 = vmul.f32 0.70710677, %v498_v55  ;;  %v584_v35 = vmul.f32 0.5, %v498_v55 }
  0xe5   : > { %v507_v62 = vpop.f32.mrf.mxu1  ;;  %v603_v0 = vmul.f32 0.70710677, %v433_v58  ;;  %1057 = verf.f32 %v600_v60  ;;  %v1358_v2 = vadd.f32 %v1342_v33, %v427_v61  ;;  %v571_v40 = vmul.f32 0.5, %v433_v58 }
  0xe6   : > { %v619_v1 = vmul.f32 0.70710677, %v1354_v59  ;;  %v949_v3 = vpop.f32.mrf.mxu0  ;;  %1059 = verf.f32 %v616_v63  ;;  %v1361_v5 = vadd.f32 %v1342_v33, %v507_v62  ;;  %v587_v60 = vmul.f32 0.5, %v1354_v59 }
  0xe7   : > { %v973_v4 = vpop.f32.mrf.mxu1  ;;  %v1364_v6 = vadd.f32 %v949_v3, %v1342_v33  ;;  %1061 = verf.f32 %v603_v0  ;;  %v602_v8 = vmul.f32 0.70710677, %v1358_v2 }
  0xe8   : > { %v1367_v7 = vadd.f32 %v973_v4, %v1342_v33  ;;  %v437_v9 = vpop.f32.mrf.mxu0  ;;  %1063 = verf.f32 %v619_v1  ;;  %v618_v13 = vmul.f32 0.70710677, %v1361_v5  ;;  %v570_v4 = vmul.f32 0.5, %v1358_v2 }
  0xe9   : > { %v517_v10 = vpop.f32.mrf.mxu1  ;;  %1065 = verf.f32 %v602_v8  ;;  %v605_v15 = vmul.f32 0.70710677, %v1364_v6  ;;  %v1379_v19 = vadd.f32 %v1342_v33, %v437_v9 }
  0xea   : > { %v621_v16 = vmul.f32 0.70710677, %v1367_v7  ;;  %v952_v17 = vpop.f32.mrf.mxu0  ;;  %1067 = verf.f32 %v618_v13  ;;  %v1382_v20 = vadd.f32 %v1342_v33, %v517_v10 }
  0xeb   : > { %v976_v18 = vpop.f32.mrf.mxu1  ;;  %v1385_v21 = vadd.f32 %v952_v17, %v1342_v33  ;;  %1069 = verf.f32 %v605_v15  ;;  %v604_v31 = vmul.f32 0.70710677, %v1379_v19 }
  0xec   : > { %v1046_v22 = vpop.eup %1045  ;;  %v1388_v25 = vadd.f32 %v976_v18, %v1342_v33  ;;  %v447_v26 = vpop.f32.mrf.mxu0  ;;  %1071 = verf.f32 %v621_v16  ;;  %v620_v36 = vmul.f32 0.70710677, %v1382_v20 }
  0xed   : > { %v527_v27 = vpop.f32.mrf.mxu1  ;;  %v1048_v28 = vpop.eup %1047  ;;  %v663_v29 = vadd.f32 1.0, %v1046_v22  ;;  %1073 = verf.f32 %v604_v31  ;;  %v607_v41 = vmul.f32 0.70710677, %v1385_v21  ;;  %v1400_v50 = vadd.f32 %v1342_v33, %v447_v26 }
  0xee   : > { %v679_v32 = vadd.f32 1.0, %v1048_v28  ;;  %v955_v37 = vpop.f32.mrf.mxu0  ;;  %v1050_v38 = vpop.eup %1049  ;;  %1075 = verf.f32 %v620_v36  ;;  %v623_v46 = vmul.f32 0.70710677, %v1388_v25  ;;  %v1403_v51 = vadd.f32 %v1342_v33, %v527_v27 }
  0xef   : > { %v695_v39 = vmul.f32 %v663_v29, %v567_v11  ;;  %v979_v42 = vpop.f32.mrf.mxu1  ;;  %v1052_v43 = vpop.eup %1051  ;;  %v662_v45 = vadd.f32 1.0, %v1050_v38  ;;  %1077 = verf.f32 %v607_v41  ;;  %v1408_v55 = vadd.f32 %v955_v37, %v1342_v33 }
  0xf0   : > { %v711_v44 = vmul.f32 %v679_v32, %v583_v12  ;;  %v457_v47 = vpop.f32.mrf.mxu0  ;;  %v1054_v48 = vpop.eup %1053  ;;  %v678_v49 = vadd.f32 1.0, %v1052_v43  ;;  %1079 = verf.f32 %v623_v46  ;;  %v606_v61 = vmul.f32 0.70710677, %v1400_v50 }
  0xf1   : > { %728 = vst.msk [vmem:[%s1395_s10 + $0x8] sm:$0xff] %vm726_vm2, %v695_v39  ;;  %v1056_v52 = vpop.eup %1055  ;;  %v694_v53 = vmul.f32 %v662_v45, %v566_v14  ;;  %v665_v54 = vadd.f32 1.0, %v1054_v48  ;;  %v537_v62 = vpop.f32.mrf.mxu1  ;;  %v622_v8 = vmul.f32 0.70710677, %v1403_v51  ;;  %v586_v11 = vmul.f32 0.5, %v1361_v5 }
  0xf2   : > { %744 = vst.msk [vmem:[%s1395_s10 + $0x88] sm:$0xff] %vm726_vm2, %v711_v44  ;;  %v1058_v56 = vpop.eup %1057  ;;  %v710_v57 = vmul.f32 %v678_v49, %v582_v23  ;;  %v681_v58 = vadd.f32 1.0, %v1056_v52  ;;  %v958_v63 = vpop.f32.mrf.mxu0  ;;  %1081 = verf.f32 %v606_v61  ;;  %v609_v15 = vmul.f32 0.70710677, %v1408_v55 }
  0xf3   : > { %v1060_v0 = vpop.eup %1059  ;;  %727 = vst.msk [vmem:[%s1395_s10] sm:$0xff] %vm726_vm2, %v694_v53  ;;  %v697_v1 = vmul.f32 %v665_v54, %v569_v24  ;;  %v664_v3 = vadd.f32 1.0, %v1058_v56  ;;  %1083 = verf.f32 %v622_v8  ;;  %v1425_v18 = vadd.f32 %v979_v42, %v1342_v33  ;;  %v982_v22 = vpop.f32.mrf.mxu1 }
  0xf4   : > { %v1062_v9 = vpop.eup %1061  ;;  %743 = vst.msk [vmem:[%s1395_s10 + $0x80] sm:$0xff] %vm726_vm2, %v710_v57  ;;  %v713_v10 = vmul.f32 %v681_v58, %v585_v30  ;;  %v680_v59 = vadd.f32 1.0, %v1060_v0  ;;  %v1428_v5 = vadd.f32 %v1342_v33, %v457_v47  ;;  %v467_v23 = vpop.f32.mrf.mxu0  ;;  %1085 = verf.f32 %v609_v15 }
  0xf5   : > { %v1064_v12 = vpop.eup %1063  ;;  %730 = vst.msk [vmem:[%s1395_s10 + $0x18] sm:$0xff] %vm726_vm2, %v697_v1  ;;  %v696_v13 = vmul.f32 %v664_v3, %v568_v34  ;;  %v667_v14 = vadd.f32 1.0, %v1062_v9  ;;  %v1433_v28 = vadd.f32 %v1342_v33, %v537_v62  ;;  %v573_v32 = vmul.f32 0.5, %v1364_v6  ;;  %v547_v6 = vpop.f32.mrf.mxu1 }
  0xf6   : > { %v1066_v2 = vpop.eup %1065  ;;  %746 = vst.msk [vmem:[%s1395_s10 + $0x98] sm:$0xff] %vm726_vm2, %v713_v10  ;;  %v712_v16 = vmul.f32 %v680_v59, %v584_v35  ;;  %v683_v17 = vadd.f32 1.0, %v1064_v12  ;;  %v625_v34 = vmul.f32 0.70710677, %v1425_v18  ;;  %v589_v38 = vmul.f32 0.5, %v1367_v7  ;;  %v961_v43 = vpop.f32.mrf.mxu0 }
  0xf7   : > { %v1068_v24 = vpop.eup %1067  ;;  %729 = vst.msk [vmem:[%s1395_s10 + $0x10] sm:$0xff] %vm726_vm2, %v696_v13  ;;  %v699_v26 = vmul.f32 %v667_v14, %v571_v40  ;;  %v666_v27 = vadd.f32 1.0, %v1066_v2  ;;  %v608_v39 = vmul.f32 0.70710677, %v1428_v5  ;;  %v572_v42 = vmul.f32 0.5, %v1379_v19  ;;  %v985_v0 = vpop.f32.mrf.mxu1 }
  0xf8   : > { %v1070_v29 = vpop.eup %1069  ;;  %745 = vst.msk [vmem:[%s1395_s10 + $0x90] sm:$0xff] %vm726_vm2, %v712_v16  ;;  %v715_v30 = vmul.f32 %v683_v17, %v587_v60  ;;  %v682_v31 = vadd.f32 1.0, %v1068_v24  ;;  %1087 = verf.f32 %v625_v34  ;;  %v624_v7 = vmul.f32 0.70710677, %v1433_v28  ;;  %v477_v1 = vpop.f32.mrf.mxu0 }
  0xf9   : > { %v1072_v35 = vpop.eup %1071  ;;  %732 = vst.msk [vmem:[%s1395_s10 + $0x28] sm:$0xff] %vm726_vm2, %v699_v26  ;;  %v698_v36 = vmul.f32 %v666_v27, %v570_v4  ;;  %v669_v37 = vadd.f32 1.0, %v1070_v29  ;;  %1089 = verf.f32 %v608_v39  ;;  %v1450_v46 = vadd.f32 %v958_v63, %v1342_v33 }
  0xfa   : > { %748 = vst.msk [vmem:[%s1395_s10 + $0xa8] sm:$0xff] %vm726_vm2, %v715_v30  ;;  %v714_v40 = vmul.f32 %v682_v31, %v586_v11  ;;  %v685_v41 = vadd.f32 1.0, %v1072_v35  ;;  %v1074_v44 = vpop.eup %1073  ;;  %v1455_v49 = vadd.f32 %v982_v22, %v1342_v33  ;;  %v1458_v52 = vadd.f32 %v1342_v33, %v467_v23  ;;  %v557_v23 = vpop.f32.mrf.mxu1 }
  0xfb   : > { %731 = vst.msk [vmem:[%s1395_s10 + $0x20] sm:$0xff] %vm726_vm2, %v698_v36  ;;  %v701_v45 = vmul.f32 %v669_v37, %v573_v32  ;;  %v1076_v47 = vpop.eup %1075  ;;  %v668_v19 = vadd.f32 1.0, %v1074_v44  ;;  %v588_v54 = vmul.f32 0.5, %v1382_v20  ;;  %1091 = verf.f32 %v624_v7 }
  0xfc   : > { %747 = vst.msk [vmem:[%s1395_s10 + $0xa0] sm:$0xff] %vm726_vm2, %v714_v40  ;;  %v717_v48 = vmul.f32 %v685_v41, %v589_v38  ;;  %v1078_v53 = vpop.eup %1077  ;;  %v684_v56 = vadd.f32 1.0, %v1076_v47  ;;  %v611_v57 = vmul.f32 0.70710677, %v1450_v46  ;;  %v575_v61 = vmul.f32 0.5, %v1385_v21 }
  0xfd   : > { %734 = vst.msk [vmem:[%s1395_s10 + $0x38] sm:$0xff] %vm726_vm2, %v701_v45  ;;  %v1080_v58 = vpop.eup %1079  ;;  %v700_v60 = vmul.f32 %v668_v19, %v572_v42  ;;  %v671_v62 = vadd.f32 1.0, %v1078_v53  ;;  %v627_v63 = vmul.f32 0.70710677, %v1455_v49  ;;  %v591_v20 = vmul.f32 0.5, %v1388_v25 }
  0xfe   : > { %750 = vst.msk [vmem:[%s1395_s10 + $0xb8] sm:$0xff] %vm726_vm2, %v717_v48  ;;  %v716_v3 = vmul.f32 %v684_v56, %v588_v54  ;;  %v687_v4 = vadd.f32 1.0, %v1080_v58  ;;  %1093 = verf.f32 %v611_v57  ;;  %v610_v9 = vmul.f32 0.70710677, %v1458_v52 }
  0xff   : > { %733 = vst.msk [vmem:[%s1395_s10 + $0x30] sm:$0xff] %vm726_vm2, %v700_v60  ;;  %v703_v8 = vmul.f32 %v671_v62, %v575_v61  ;;  %1095 = verf.f32 %v627_v63  ;;  %v1473_v21 = vadd.f32 %v1342_v33, %v547_v6  ;;  %v1082_v10 = vpop.eup %1081  ;;  %v1478_v11 = vadd.f32 %v961_v43, %v1342_v33 }
 0x100   : > { %749 = vst.msk [vmem:[%s1395_s10 + $0xb0] sm:$0xff] %vm726_vm2, %v716_v3  ;;  %v719_v59 = vmul.f32 %v687_v4, %v591_v20  ;;  %v1481_v25 = vadd.f32 %v985_v0, %v1342_v33  ;;  %v1484_v12 = vadd.f32 %v1342_v33, %v477_v1  ;;  %v1084_v13 = vpop.eup %1083  ;;  %v574_v14 = vmul.f32 0.5, %v1400_v50 }
 0x101   : > { %736 = vst.msk [vmem:[%s1395_s10 + $0x48] sm:$0xff] %vm726_vm2, %v703_v8  ;;  %v670_v15 = vadd.f32 1.0, %v1082_v10  ;;  %1097 = verf.f32 %v610_v9  ;;  %v626_v2 = vmul.f32 0.70710677, %v1473_v21  ;;  %v590_v16 = vmul.f32 0.5, %v1403_v51  ;;  %v1086_v24 = vpop.eup %1085 }
 0x102   : > { %752 = vst.msk [vmem:[%s1395_s10 + $0xc8] sm:$0xff] %vm726_vm2, %v719_v59  ;;  %v686_v17 = vadd.f32 1.0, %v1084_v13  ;;  %v613_v22 = vmul.f32 0.70710677, %v1478_v11  ;;  %v577_v27 = vmul.f32 0.5, %v1408_v55  ;;  %v673_v30 = vadd.f32 1.0, %v1086_v24 }
 0x103   : > { %v702_v26 = vmul.f32 %v670_v15, %v574_v14  ;;  %1099 = verf.f32 %v626_v2  ;;  %v629_v50 = vmul.f32 0.70710677, %v1481_v25  ;;  %v612_v31 = vmul.f32 0.70710677, %v1484_v12 }
 0x104   : > { %v718_v29 = vmul.f32 %v686_v17, %v590_v16  ;;  %1101 = verf.f32 %v613_v22  ;;  %v558_v51 = vadd.f32 %v1342_v33, %v557_v23  ;;  %v705_v34 = vmul.f32 %v673_v30, %v577_v27 }
 0x105   : > { %735 = vst.msk [vmem:[%s1395_s10 + $0x40] sm:$0xff] %vm726_vm2, %v702_v26  ;;  %1103 = verf.f32 %v629_v50  ;;  %v1088_v32 = vpop.eup %1087  ;;  %v593_v35 = vmul.f32 0.5, %v1425_v18  ;;  %v576_v38 = vmul.f32 0.5, %v1428_v5  ;;  %v592_v42 = vmul.f32 0.5, %v1433_v28 }
 0x106   : > { %751 = vst.msk [vmem:[%s1395_s10 + $0xc0] sm:$0xff] %vm726_vm2, %v718_v29  ;;  %1105 = verf.f32 %v612_v31  ;;  %v1090_v55 = vpop.eup %1089  ;;  %v689_v36 = vadd.f32 1.0, %v1088_v32  ;;  %v628_v37 = vmul.f32 0.70710677, %v558_v51  ;;  %738 = vst.msk [vmem:[%s1395_s10 + $0x58] sm:$0xff] %vm726_vm2, %v705_v34  ;;  %v579_v5 = vmul.f32 0.5, %v1450_v46 }
 0x107   : > { %v672_v39 = vadd.f32 1.0, %v1090_v55  ;;  %v595_v7 = vmul.f32 0.5, %v1455_v49  ;;  %v578_v53 = vmul.f32 0.5, %v1458_v52  ;;  %v594_v49 = vmul.f32 0.5, %v1473_v21 }
 0x108   : > { %v1092_v40 = vpop.eup %1091  ;;  %v721_v33 = vmul.f32 %v689_v36, %v593_v35  ;;  %1107 = verf.f32 %v628_v37  ;;  %v581_v61 = vmul.f32 0.5, %v1478_v11  ;;  %v597_v0 = vmul.f32 0.5, %v1481_v25 }
 0x109   : > { %v704_v41 = vmul.f32 %v672_v39, %v576_v38  ;;  %v688_v6 = vadd.f32 1.0, %v1092_v40  ;;  %v580_v20 = vmul.f32 0.5, %v1484_v12  ;;  %v596_v10 = vmul.f32 0.5, %v558_v51 }
 0x10a   : > { %754 = vst.msk [vmem:[%s1395_s10 + $0xd8] sm:$0xff] %vm726_vm2, %v721_v33 }
 0x10b   : > { %v1094_v43 = vpop.eup %1093  ;;  %737 = vst.msk [vmem:[%s1395_s10 + $0x50] sm:$0xff] %vm726_vm2, %v704_v41  ;;  %v720_v44 = vmul.f32 %v688_v6, %v592_v42 }
 0x10c   : > { %v1096_v18 = vpop.eup %1095  ;;  %v675_v45 = vadd.f32 1.0, %v1094_v43 }
 0x10d   : > { %v691_v47 = vadd.f32 1.0, %v1096_v18  ;;  %753 = vst.msk [vmem:[%s1395_s10 + $0xd0] sm:$0xff] %vm726_vm2, %v720_v44 }
 0x10e   : > { %v1098_v48 = vpop.eup %1097  ;;  %v707_v28 = vmul.f32 %v675_v45, %v579_v5 }
 0x10f   : > { %v723_v19 = vmul.f32 %v691_v47, %v595_v7  ;;  %v674_v54 = vadd.f32 1.0, %v1098_v48 }
 0x110   : > { %v1100_v56 = vpop.eup %1099  ;;  %740 = vst.msk [vmem:[%s1395_s10 + $0x68] sm:$0xff] %vm726_vm2, %v707_v28 }
 0x111   : > { %v1102_v57 = vpop.eup %1101  ;;  %756 = vst.msk [vmem:[%s1395_s10 + $0xe8] sm:$0xff] %vm726_vm2, %v723_v19  ;;  %v706_v46 = vmul.f32 %v674_v54, %v578_v53  ;;  %v690_v58 = vadd.f32 1.0, %v1100_v56 }
 0x112   : > { %v1104_v60 = vpop.eup %1103  ;;  %v677_v62 = vadd.f32 1.0, %v1102_v57 }
 0x113   : > { %v1106_v52 = vpop.eup %1105  ;;  %739 = vst.msk [vmem:[%s1395_s10 + $0x60] sm:$0xff] %vm726_vm2, %v706_v46  ;;  %v722_v63 = vmul.f32 %v690_v58, %v594_v49  ;;  %v693_v1 = vadd.f32 1.0, %v1104_v60 }
 0x114   : > { %v709_v3 = vmul.f32 %v677_v62, %v581_v61  ;;  %v676_v4 = vadd.f32 1.0, %v1106_v52 }
 0x115   : > { %755 = vst.msk [vmem:[%s1395_s10 + $0xe0] sm:$0xff] %vm726_vm2, %v722_v63  ;;  %v725_v8 = vmul.f32 %v693_v1, %v597_v0  ;;  %v1108_v9 = vpop.eup %1107 }
 0x116   : > { %742 = vst.msk [vmem:[%s1395_s10 + $0x78] sm:$0xff] %vm726_vm2, %v709_v3  ;;  %v708_v21 = vmul.f32 %v676_v4, %v580_v20  ;;  %v692_v59 = vadd.f32 1.0, %v1108_v9 }
 0x117   : > { %758 = vst.msk [vmem:[%s1395_s10 + $0xf8] sm:$0xff] %vm726_vm2, %v725_v8 }
 0x118   : > { %741 = vst.msk [vmem:[%s1395_s10 + $0x70] sm:$0xff] %vm726_vm2, %v708_v21  ;;  %v724_v11 = vmul.f32 %v692_v59, %v596_v10 }
 0x11a   : > { %757 = vst.msk [vmem:[%s1395_s10 + $0xf0] sm:$0xff] %vm726_vm2, %v724_v11 }
 0x11b   : > { %1122 = shalt.err (!%p1119_p5)
}
 0x11c   : > { %s1123_s30 = scalar_lea.hbm %s1539_s23, 4096  ;;  %s1127_s6 = scalar_lea.hbm %s1595_s3, 8192 }
 0x11d   : > { %p1124_p6 = scmp.ne.s32.totalorder %s1539_s23, %s1123_s30  ;;  %p1128_p10 = scmp.lt.s32.totalorder %s1539_s23, %s1595_s3 }
 0x11e   : > { %p1129_p11 = scmp.lt.s32.totalorder %s1127_s6, %s1123_s30 }
 0x11f   : > { %p1125_p7 = pnand %p1124_p6, %p1250_p4 }
 0x120   : > { %p1130_p12 = por %p1129_p11, %p1128_p10 }
 0x121   : > { %p1126_p9 = pneg %p1125_p7 }
 0x123   : > { %p1131_p13 = pnand %p1130_p12, %p1126_p9 }
 0x125   : > { %1134 = shalt.err (!%p1131_p13)
}
 0x126   : > { %s1188_s9 = smov 128   ;;  %s1189_s10 = smov 8  }
 0x127   : > { %988 = dma.vmem_to_hbm [thread:$0]  (%p1250_p4), %s1541_s18, 4096, %s1539_s23, %s1547_s15, %s1188_s9, %s1188_s9, %s1189_s10  }
 0x128 PF: > { %p994_p0 = scmp.ge.s32.totalorder %s1185_s17, 2  ;;  %s790_s11 = sand.u32 1, %s1165_s12  }
 0x129   : > { %s791_s19 = scalar_lea.sflag [#allocation3], %s790_s11 }
 0x12a   : > { %p991_p1 = pnand %p994_p0, %p1257_p8 }
 0x12c   : > { %p992_p2 = pneg %p991_p1 }
 0x12e   : > { %1160 = dma.done.wait (%p992_p2), %s791_s19, 4096  }
 0x12f   : > { %1162 = vsyncadd (%p992_p2), %s791_s19, 4294963200  ;;  %s16_s17 = sadd.s32 1, %s1185_s17   ;;  %s1598_s12 = smov %s1169_s13 }
 0x130   : > { %p13_p3 = scmp.ge.s32.totalorder %s16_s17, 4   ;;  %s1599_s13 = smov %s1173_s14 }
 0x131   : > { %s1600_s14 = smov %s1263_s25  ;;  %s1601_s15 = smov %s1181_s16 }
 0x132   : > { %s1602_s16 = smov %s1604_s20  ;;  %15 = sbr.rel (!%p13_p3) target bundleno = 4 (0x4), region = 67 }
 0x137   :  { %796 = vsyncpa [#allocation3], 1 }
 0x138   :  { %798 = vsyncpa [#allocation3 + $0x1], 1 }

</bundles_post_ra>
